<compile_context>
chip_gen: v5e
topology: v5e:2x2
jax: 0.10.0
libtpu: 0.0.40
codegen_flags: <defaults>
</compile_context>

<pallas_src>
import jax
import jax.numpy as jnp
from jax.experimental import pallas as pl
from jax.experimental.pallas import tpu as pltpu


_HP = 128      # lane-dense hidden width (fil hidden dim zero-padded to one lane group)
_LANES = 128


def _round_up(x, m):
    return ((x + m - 1) // m) * m


def _pershom_partial_kernel(seg_ref, x_ref, w1_ref, params_ref, out_ref, g_acc):
    """Node-filtration MLP + 'sum' readout partial sums for one core's node tiles.

    grid = (num_cores, node_tiles_per_core); axis 0 is "parallel" (megacore sharding on v7x),
    axis 1 is "arbitrary" and carries the readout accumulator.
    """
    i = pl.program_id(1)

    @pl.when(i == 0)
    def _init():
        g_acc[...] = jnp.zeros_like(g_acc)

    # packed small parameters (single resident (8,128) tile)
    b1 = params_ref[0:1, :]    # [1, HP]; lane H holds 1.0 (ones column so lane H of h is exactly 1)
    w2 = params_ref[1:2, :]    # [1, HP]; lane H holds b2 (so the H->1 reduce already includes b2)

    # 2) node filtration self.fil: bf16 x @ bf16 w1 on the MXU with f32 accumulation, then
    #    bias + relu + H->1 projection + sigmoid fused in one expression
    #    (VPU add/max/mul, XLU lane reduce, EUP exp) -- no extra [tm,*] temporaries.
    #    (column-dropout mask already folded into w1 in the wrapper)
    h = jnp.dot(x_ref[...], w1_ref[...], preferred_element_type=jnp.float32)          # [TM, HP]
    nf = jax.nn.sigmoid(
        jnp.sum(jnp.maximum(h + b1, 0.0) * w2, axis=1, keepdims=True))                # [TM, 1]

    # 3) 'sum' readout (global_add_pool): select against the streamed graph-id column and reduce
    #    over sublanes into a lane-dense [1,128] accumulator.  gid_row is a single-vreg iota
    #    (no [TM,B] iota regenerated per step); padded rows carry seg id = -1 -> contribute 0.
    gid_row = jax.lax.broadcasted_iota(jnp.int32, (1, _LANES), 1)                      # [1, 128]
    contrib = jnp.where(seg_ref[...] == gid_row, nf, 0.0)                              # [TM, 128]
    g_acc[...] += jnp.sum(contrib, axis=0, keepdims=True)                              # [1, 128]

    @pl.when(i == pl.num_programs(1) - 1)
    def _finalize():
        # lane-dense (8,128) store; per-graph partial sums live in sublane 0, lanes 0:B
        sub = jax.lax.broadcasted_iota(jnp.int32, (8, _LANES), 0)
        out_ref[...] = jnp.where(sub == 0, g_acc[...], 0.0)


def pershom_forward(x, seg_ids, col_mask, w1, b1, w2, b2, wc, bc, *,
                    num_graphs, tile_m=4096, num_cores=2):
    f32 = jnp.float32
    bf16 = jnp.bfloat16
    N, F = x.shape
    H = w1.shape[1]
    B = int(num_graphs)
    assert H + 1 <= _HP, "fil hidden dim (+1 ones column) must fit in 128 lanes"
    assert B <= _LANES, "readout packs graph ids into one 128-lane group"

    # --- fold the column-dropout mask into w1 (zeroing x columns == zeroing w1 rows), zero-pad
    #     the hidden dim to 128 lanes, and stream x / w1 as bf16 (native MXU dtype; halves the
    #     only large HBM stream).  All accumulation stays f32. ---
    w1m = w1.astype(f32) * col_mask.astype(f32).reshape(F, 1)
    w1p = jnp.zeros((F, _HP), f32).at[:, :H].set(w1m).astype(bf16)

    # --- pack the remaining tiny fil parameters into a single resident (8,128) tile:
    #     row 0: b1 (zero-padded), lane H = 1.0 ; row 1: w2 (zero-padded), lane H = b2 ---
    params = jnp.zeros((8, _LANES), f32)
    params = params.at[0, :H].set(b1.astype(f32)).at[0, H].set(1.0)
    params = params.at[1, :H].set(w2.astype(f32)).at[1, H].set(jnp.asarray(b2, f32))

    # --- node tiling: big tiles amortize the ~0.35 us per-grid-step overhead; tm is a multiple of
    #     16 (bf16 sublane packing) and auto-capped by an explicit VMEM budget that is safe on v7x
    #     (64 MiB physical / 32 MiB default scoped). ---
    def vmem_bytes(tm_):
        # per row: x bf16 lane-padded to 128 (double buffered) + seg i32 lane-padded (double
        # buffered) + f32 temporaries h / contrib / nf; plus w1/params/out/acc + slack.
        per_row = 2 * (2 * _LANES) + 2 * (4 * _LANES) + 3 * (4 * _LANES)
        return per_row * tm_ + (1 << 20)

    VMEM_CAP = 48 << 20                              # v7x-safe scoped budget with headroom
    tm = min(int(tile_m), _round_up(N, 16))
    tm = max(16, (tm // 16) * 16)
    while vmem_bytes(tm) > VMEM_CAP and tm > 16:
        tm = max(16, ((tm // 2) // 16) * 16)

    nc_grid = max(1, int(num_cores))
    n_tiles = pl.cdiv(N, tm)
    tiles_per_core = pl.cdiv(n_tiles, nc_grid)
    n_pad = nc_grid * tiles_per_core * tm

    # padded rows carry seg id = -1 and therefore contribute nothing to the readout
    x_p = jnp.zeros((n_pad, F), bf16).at[:N, :].set(x.astype(bf16))
    seg_p = jnp.full((n_pad, 1), -1, jnp.int32).at[:N, 0].set(seg_ids.astype(jnp.int32))

    cost = pl.CostEstimate(
        flops=2 * n_pad * F * _HP + 6 * n_pad * _LANES,
        transcendentals=n_pad,
        bytes_accessed=(n_pad * F * 2 + n_pad * 4 + F * _HP * 2
                        + 8 * _LANES * 4 + nc_grid * 8 * _LANES * 4),
    )

    partials = pl.pallas_call(
        _pershom_partial_kernel,
        out_shape=jax.ShapeDtypeStruct((nc_grid * 8, _LANES), f32),
        grid=(nc_grid, tiles_per_core),
        in_specs=[
            pl.BlockSpec((tm, 1), lambda c, i: (c * tiles_per_core + i, 0)),   # per-node graph ids
            pl.BlockSpec((tm, F), lambda c, i: (c * tiles_per_core + i, 0)),   # node features (bf16 stream)
            pl.BlockSpec((F, _HP), lambda c, i: (0, 0)),                       # masked + padded fil weight (resident)
            pl.BlockSpec((8, _LANES), lambda c, i: (0, 0)),                    # packed small params (resident)
        ],
        out_specs=pl.BlockSpec((8, _LANES), lambda c, i: (c, 0)),              # per-core partial readout
        scratch_shapes=[pltpu.VMEM((1, _LANES), f32)],                         # per-core readout accumulator
        compiler_params=pltpu.CompilerParams(
            dimension_semantics=("parallel", "arbitrary"),
            vmem_limit_bytes=int(min(max(vmem_bytes(tm), 32 << 20), VMEM_CAP))),
        cost_estimate=cost,
    )(seg_p, x_p, w1p, params)

    # 4) sum the per-core partials, classifier_gnn (Linear 1 -> C) and LogSoftmax(dim=1).
    #    Only B x C elements, so this stays as trivial follow-up ops; emitting per-core partials
    #    is what lets the node-streaming kernel shard across v7x's two TensorCores.
    g1 = jnp.sum(partials[:, :B], axis=0)                                      # (B,)
    logits = g1[:, None] * wc.astype(f32)[None, :] + bc.astype(f32)[None, :]   # (B, C)
    return jax.nn.log_softmax(logits, axis=1)


if __name__ == "__main__":
    key = jax.random.PRNGKey(0)
    N, F, H, B, C = 100, 16, 32, 4, 8     # nodes, feature dim, fil hidden dim, graphs, classes
    p = 0.01                              # self.p in the module

    ks = jax.random.split(key, 8)

    # batch.x : node features
    x = jax.random.normal(ks[0], (N, F), dtype=jnp.float32)

    # column dropout: idx = uniform(0,1) < p -> zero those columns (kept-columns mask)
    drop = jax.random.uniform(ks[1], (F,)) < p
    col_mask = (~drop).astype(jnp.float32)

    # batch.batch : graph assignment with uneven, contiguous segments
    sizes = (30, 20, 35, 15)
    seg_ids = jnp.concatenate([jnp.full((s,), g, jnp.int32) for g, s in enumerate(sizes)])

    # deterministic xavier-uniform init (matches init_weights for nn.Linear)
    def xavier(k, shape):
        fan_in, fan_out = shape
        lim = (6.0 / (fan_in + fan_out)) ** 0.5
        return jax.random.uniform(k, shape, jnp.float32, -lim, lim)

    w1 = xavier(ks[2], (F, H)); b1 = jnp.zeros((H,), jnp.float32)      # fil layer 1
    w2 = xavier(ks[3], (H, 1))[:, 0]; b2 = jnp.zeros((), jnp.float32)  # fil layer 2 -> scalar
    wc = xavier(ks[4], (1, C))[0]; bc = jnp.zeros((C,), jnp.float32)   # classifier_gnn

    # small tile + 2-way "parallel" core axis so the demo exercises multi-step accumulation,
    # per-core partials and row padding
    out = pershom_forward(x, seg_ids, col_mask, w1, b1, w2, b2, wc, bc,
                          num_graphs=B, tile_m=32, num_cores=2)
    out = jax.block_until_ready(out)

    # pure-JAX reference ('sum' readout branch of PershomBase.forward), with the same bf16
    # rounding applied to the streamed x / masked-w1 operands (full-precision everywhere else)
    x_bf = x.astype(jnp.bfloat16).astype(jnp.float32)
    w1m_bf = (w1 * col_mask[:, None]).astype(jnp.bfloat16).astype(jnp.float32)
    hh = jnp.maximum(
        jnp.dot(x_bf, w1m_bf, precision=jax.lax.Precision.HIGHEST) + b1[None, :], 0.0)
    nf = jax.nn.sigmoid(jnp.dot(hh, w2, precision=jax.lax.Precision.HIGHEST) + b2)   # (N,)
    g1 = jax.ops.segment_sum(nf, seg_ids, num_segments=B)                            # (B,)
    logits = g1[:, None] * wc[None, :] + bc[None, :]
    ref = jax.nn.log_softmax(logits, axis=1)

    assert out.shape == (B, C)
    assert jnp.allclose(out, ref, atol=1e-4, rtol=1e-4), "mismatch vs pure-JAX reference"

    print("KERNEL_OK")
</pallas_src>

<mosaic_0001>
module attributes {stable_mosaic.version = 11 : i64} {
  func.func @_pershom_partial_kernel(%arg0: i32, %arg1: i32, %arg2: memref<32x1xi32, #tpu.memory_space<vmem>>, %arg3: memref<32x16xbf16, #tpu.memory_space<vmem>>, %arg4: memref<16x128xbf16, #tpu.memory_space<vmem>>, %arg5: memref<8x128xf32, #tpu.memory_space<vmem>>, %arg6: memref<8x128xf32, #tpu.memory_space<vmem>>, %arg7: memref<1x128xf32, #tpu.memory_space<vmem>>) attributes {dimension_semantics = [#tpu.dimension_semantics<parallel>, #tpu.dimension_semantics<arbitrary>], iteration_bounds = array<i64: 2, 2>, scalar_prefetch = 0 : i64, scratch_operands = 1 : i64, tpu.core_type = #tpu.core_type<tc>, window_params = [{transform_indices = @transform_0, window_bounds = array<i64: 32, 1>}, {transform_indices = @transform_1, window_bounds = array<i64: 32, 16>}, {pipeline_mode = #tpu.pipeline_mode<synchronous>, transform_indices = @transform_2, window_bounds = array<i64: 16, 128>}, {pipeline_mode = #tpu.pipeline_mode<synchronous>, transform_indices = @transform_3, window_bounds = array<i64: 8, 128>}, {transform_indices = @transform_4, window_bounds = array<i64: 8, 128>}]} {
    %c0_i32 = arith.constant 0 : i32
    %0 = arith.cmpi eq, %arg1, %c0_i32 : i32
    %1 = arith.extui %0 : i1 to i32
    %c0_i32_0 = arith.constant 0 : i32
    %2 = arith.cmpi ne, %1, %c0_i32_0 : i32
    scf.if %2 {
      %cst_19 = arith.constant 0.000000e+00 : f32
      %38 = vector.broadcast %cst_19 : f32 to vector<1x128xf32>
      %c0_20 = arith.constant 0 : index
      %c0_21 = arith.constant 0 : index
      %39 = vector.load %arg7[%c0_20, %c0_21] : memref<1x128xf32, #tpu.memory_space<vmem>>, vector<1x128xf32>
      tpu.vector_store %arg7[%c0_20, %c0_21], %38 {strides = array<i32>} : memref<1x128xf32, #tpu.memory_space<vmem>>, vector<1x128xf32>,
    } else {
    }
    %c0 = arith.constant 0 : index
    %c0_1 = arith.constant 0 : index
    %3 = vector.load %arg5[%c0, %c0_1] : memref<8x128xf32, #tpu.memory_space<vmem>>, vector<1x128xf32>
    %c1 = arith.constant 1 : index
    %c0_2 = arith.constant 0 : index
    %4 = vector.load %arg5[%c1, %c0_2] : memref<8x128xf32, #tpu.memory_space<vmem>>, vector<1x128xf32>
    %c0_3 = arith.constant 0 : index
    %c0_4 = arith.constant 0 : index
    %5 = vector.load %arg3[%c0_3, %c0_4] : memref<32x16xbf16, #tpu.memory_space<vmem>>, vector<32x16xbf16>
    %c0_5 = arith.constant 0 : index
    %c0_6 = arith.constant 0 : index
    %6 = vector.load %arg4[%c0_5, %c0_6] : memref<16x128xbf16, #tpu.memory_space<vmem>>, vector<16x128xbf16>
    %cst = arith.constant dense<0.000000e+00> : vector<32x128xf32>
    %7 = tpu.matmul %5, %6, %cst {dimension_numbers = #tpu.dot_dimension_numbers<[1], [0], [0], [1], [0, 0, 1, 1], [], []>} : vector<32x16xbf16>, vector<16x128xbf16>, vector<32x128xf32> -> vector<32x128xf32>
    %8 = vector.broadcast %3 : vector<1x128xf32> to vector<32x128xf32>
    %9 = arith.addf %7, %8 : vector<32x128xf32>
    %cst_7 = arith.constant 0.000000e+00 : f32
    %10 = vector.broadcast %cst_7 : f32 to vector<32x128xf32>
    %11 = arith.maximumf %9, %10 : vector<32x128xf32>
    %12 = vector.broadcast %4 : vector<1x128xf32> to vector<32x128xf32>
    %13 = arith.mulf %11, %12 : vector<32x128xf32>
    %cst_8 = arith.constant dense<0.000000e+00> : vector<32xf32>
    %14 = vector.multi_reduction <add>, %13, %cst_8 [1] : vector<32x128xf32> to vector<32xf32>
    %15 = vector.shape_cast %14 : vector<32xf32> to vector<32x1xf32>
    %16 = arith.negf %15 : vector<32x1xf32>
    %17 = math.exp %16 : vector<32x1xf32>
    %cst_9 = arith.constant 1.000000e+00 : f32
    %18 = vector.broadcast %cst_9 : f32 to vector<32x1xf32>
    %19 = arith.addf %18, %17 : vector<32x1xf32>
    %20 = arith.divf %18, %19 : vector<32x1xf32>
    %21 = tpu.iota {dimensions = array<i32: 1>} : vector<1x128xi32>
    %c0_10 = arith.constant 0 : index
    %c0_11 = arith.constant 0 : index
    %22 = vector.load %arg2[%c0_10, %c0_11] : memref<32x1xi32, #tpu.memory_space<vmem>>, vector<32x1xi32>
    %23 = vector.broadcast %22 : vector<32x1xi32> to vector<32x128xi32>
    %24 = vector.broadcast %21 : vector<1x128xi32> to vector<32x128xi32>
    %25 = arith.cmpi eq, %23, %24 : vector<32x128xi32>
    %cst_12 = arith.constant 0.000000e+00 : f32
    %26 = vector.shape_cast %20 : vector<32x1xf32> to vector<32x1xf32>
    %27 = vector.broadcast %26 : vector<32x1xf32> to vector<32x128xf32>
    %28 = vector.broadcast %cst_12 : f32 to vector<32x128xf32>
    %29 = arith.select %25, %27, %28 : vector<32x128xi1>, vector<32x128xf32>
    %c0_13 = arith.constant 0 : index
    %c0_14 = arith.constant 0 : index
    %30 = vector.load %arg7[%c0_13, %c0_14] : memref<1x128xf32, #tpu.memory_space<vmem>>, vector<1x128xf32>
    %cst_15 = arith.constant dense<0.000000e+00> : vector<128xf32>
    %31 = vector.multi_reduction <add>, %29, %cst_15 [0] : vector<32x128xf32> to vector<128xf32>
    %32 = vector.shape_cast %31 : vector<128xf32> to vector<1x128xf32>
    %33 = arith.addf %30, %32 : vector<1x128xf32>
    %c0_16 = arith.constant 0 : index
    %c0_17 = arith.constant 0 : index
    %34 = vector.load %arg7[%c0_16, %c0_17] : memref<1x128xf32, #tpu.memory_space<vmem>>, vector<1x128xf32>
    tpu.vector_store %arg7[%c0_16, %c0_17], %33 {strides = array<i32>} : memref<1x128xf32, #tpu.memory_space<vmem>>, vector<1x128xf32>,
    %c1_i32 = arith.constant 1 : i32
    %35 = arith.cmpi eq, %arg1, %c1_i32 : i32
    %36 = arith.extui %35 : i1 to i32
    %c0_i32_18 = arith.constant 0 : i32
    %37 = arith.cmpi ne, %36, %c0_i32_18 : i32
    scf.if %37 {
      %38 = tpu.iota {dimensions = array<i32: 0>} : vector<8x128xi32>
      %c0_i32_19 = arith.constant 0 : i32
      %39 = vector.broadcast %c0_i32_19 : i32 to vector<8x128xi32>
      %40 = arith.cmpi eq, %38, %39 : vector<8x128xi32>
      %c0_20 = arith.constant 0 : index
      %c0_21 = arith.constant 0 : index
      %41 = vector.load %arg7[%c0_20, %c0_21] : memref<1x128xf32, #tpu.memory_space<vmem>>, vector<1x128xf32>
      %cst_22 = arith.constant 0.000000e+00 : f32
      %42 = vector.shape_cast %41 : vector<1x128xf32> to vector<1x128xf32>
      %43 = vector.broadcast %42 : vector<1x128xf32> to vector<8x128xf32>
      %44 = vector.broadcast %cst_22 : f32 to vector<8x128xf32>
      %45 = arith.select %40, %43, %44 : vector<8x128xi1>, vector<8x128xf32>
      %c0_23 = arith.constant 0 : index
      %c0_24 = arith.constant 0 : index
      %46 = vector.load %arg6[%c0_23, %c0_24] : memref<8x128xf32, #tpu.memory_space<vmem>>, vector<8x128xf32>
      tpu.vector_store %arg6[%c0_23, %c0_24], %45 {strides = array<i32>} : memref<8x128xf32, #tpu.memory_space<vmem>>, vector<8x128xf32>,
    } else {
    }
    return
  }
  func.func @transform_0(%arg0: i32, %arg1: i32) -> (i32, i32) {
    %c2_i32 = arith.constant 2 : i32
    %0 = arith.muli %arg0, %c2_i32 : i32
    %1 = arith.addi %0, %arg1 : i32
    %c0_i32 = arith.constant 0 : i32
    %c0_i32_0 = arith.constant 0 : i32
    return %1, %c0_i32 : i32, i32
  }
  func.func @transform_1(%arg0: i32, %arg1: i32) -> (i32, i32) {
    %c2_i32 = arith.constant 2 : i32
    %0 = arith.muli %arg0, %c2_i32 : i32
    %1 = arith.addi %0, %arg1 : i32
    %c0_i32 = arith.constant 0 : i32
    %c0_i32_0 = arith.constant 0 : i32
    return %1, %c0_i32 : i32, i32
  }
  func.func @transform_2(%arg0: i32, %arg1: i32) -> (i32, i32) {
    %c0_i32 = arith.constant 0 : i32
    %c0_i32_0 = arith.constant 0 : i32
    %c0_i32_1 = arith.constant 0 : i32
    return %c0_i32, %c0_i32_0 : i32, i32
  }
  func.func @transform_3(%arg0: i32, %arg1: i32) -> (i32, i32) {
    %c0_i32 = arith.constant 0 : i32
    %c0_i32_0 = arith.constant 0 : i32
    %c0_i32_1 = arith.constant 0 : i32
    return %c0_i32, %c0_i32_0 : i32, i32
  }
  func.func @transform_4(%arg0: i32, %arg1: i32) -> (i32, i32) {
    %c0_i32 = arith.constant 0 : i32
    %c0_i32_0 = arith.constant 0 : i32
    return %arg0, %c0_i32 : i32, i32
  }
}

</mosaic_0001>

<bundles_post_ra>
// kernel: tpu_custom_call.1
= control target key start
LH: loop header
LB: loop body
LE: loop exit
PB: predicated region body
PF: predicated region fallthrough
CT: control target
= control target key end

     0   :  { %9 = vsyncpa [#allocation4], 0  ;;  %s1021_s0 = inlined_call_operand.vmem [shape: s32[128,1], index: 0, kind: input, shape index: {}]   ;;  %s1022_s1 = inlined_call_operand.vmem [shape: bf16[128,16], index: 1, kind: input, shape index: {}]   ;;  %s1023_s2 = inlined_call_operand.vmem [shape: bf16[16,128], index: 2, kind: input, shape index: {}]   ;;  %s1024_s3 = inlined_call_operand.vmem [shape: f32[8,128], index: 3, kind: input, shape index: {}]   ;;  %s1025_s4 = inlined_call_operand.hbm [shape: f32[16,128], index: 4, kind: output, shape index: {}]  }
   0x1   :  { %11 = vsyncpa [#allocation4 + $0x1], 0  ;;  %s821_s15 = smov 0   ;;  %s823_s16 = smov 0  }
   0x2   :  { %s825_s17 = smov 0   ;;  %s827_s18 = smov 0  }
   0x3   :  { %s829_s19 = smov 0   ;;  %s831_s20 = smov 0  }
   0x4   :  { %s833_s21 = smov 0   ;;  %s835_s22 = smov 0  }
   0x5 LB: > { %s559_s23 = sadd.s32 4294967295, %s792_s22   ;;  %s560_s24 = sadd.s32 4294967294, %s792_s22   ;;  %s792_s22 = sphi %s835_s22, %s17_s22   ;;  %s788_s21 = sphi %s833_s21, %s1043_s21   ;;  %s784_s20 = sphi %s831_s20, %s1042_s20   ;;  %s780_s19 = sphi %s829_s19, %s1041_s19   ;;  %s776_s18 = sphi %s827_s18, %s1040_s18   ;;  %s772_s17 = sphi %s825_s17, %s1039_s17   ;;  %s768_s16 = sphi %s823_s16, %s1038_s16   ;;  %s764_s15 = sphi %s821_s15, %s1037_s15  }
   0x6   : > { %s26_s25 = sadd.s32 1, %s784_s20  ;;  %s29_s26 = sadd.s32 1, %s788_s21 }
   0x7   : > { %p27_p0 = scmp.ge.s32.totalorder %s26_s25, 2  ;;  %p148_p1 = scmp.ne.s32.totalorder %s772_s17, %s768_s16 }
   0x8   : > { %p149_p2 = scmp.eq.s32.totalorder %s559_s23, 3  ;;  %p154_p4 = scmp.ne.s32.totalorder %s768_s16, %s764_s15 }
   0x9   : > { %s1045_s25 = smov (%p27_p0, %s26_s25), 0  ;;  %s1047_s26 = smov (!%p27_p0, %s29_s26), %s788_s21 }
   0xa   : > { %p870_p3 = por %p149_p2, %p148_p1  ;;  %p31_p5 = scmp.ge.s32.totalorder %s1047_s26, 2 }
   0xb   : > { %p155_p6 = scmp.eq.s32.totalorder %s560_s24, 3  ;;  %p567_p7 = scmp.ge.s32.totalorder %s792_s22, 1 }
   0xc   : > { %p205_p8 = scmp.lt.s32.totalorder %s792_s22, 5  ;;  %s1049_s26 = smov (%p31_p5, %s1047_s26), 0 }
   0xd   : > { %1028 = sst [smem:[#allocation6_spill]] %s1049_s26  ;;  %p880_p9 = por %p155_p6, %p154_p4 }
   0xe   : > { %p206_p10 = pnand %p567_p7, %p205_p8  ;;  %s135_s29 = ssub.s32 %s788_s21, %s1049_s26 }
   0xf   : > { %s138_s30 = sadd.s32 1, %s772_s17  ;;  %p136_p11 = scmp.eq.s32.totalorder %s135_s29, 0 }
  0x10   : > { %209 = sbr.rel (%p206_p10) target bundleno = 366 (0x16e), region = 36  ;;  %s237_s6 = sand.u32 (!%p206_p10), 1, %s768_s16  }
  0x11   : > { %s888_s5 = scalar_select %p136_p11, %s772_s17, %s138_s30  }
  0x12   : > { %s569_s7 = sshll.u32 (!%p206_p10), %s780_s19, 1  ;;  %s894_s8 = sshll.u32 (!%p206_p10), %s237_s6, 3 }
  0x13   : > { %s241_s9 = sadd.s32 (!%p206_p10), %s776_s18, %s569_s7  ;;  %s239_s26 = scalar_lea.vmem (!%p206_p10), [#allocation3], %s894_s8 }
  0x14   : > { %s570_s10 = sshll.u32 (!%p206_p10), %s241_s9, 2  ;;  %p575_p13 = scmp.ne.s32.totalorder (!%p206_p10), %s776_s18, 0 }
  0x15   : > { %p243_p12 = scmp.lt.s32.totalorder %s570_s10, 15 }
  0x16   : > { %264 = sbr.rel (%p575_p13) target bundleno = 29 (0x1d), region = 40 }
  0x17   : > { %s1051_s10 = smov (!%p243_p12, %s570_s10), 15 }
  0x18   : > { %s571_s11 = sshll.u32 %s1051_s10, 3  ;;  %s574_s12 = sshll.u32 %s1051_s10, 2 }
  0x19   : > { %s900_s23 = scalar_lea.vmem %s1021_s0, %s571_s11  ;;  %s256_s30 = scalar_lea.vmem %s1022_s1, %s574_s12 }
  0x1b   : > { %v794_v0 = vmov 0.0  }
  0x1c   : > { %265 = vst [vmem:[#allocation2] sm:$0x1] %v794_v0 }
  0x1d PF: > { %v601_v1 = vld [vmem:[%s1023_s2] sm:$0xff]  ;;  %v600_v3 = vld [vmem:[%s256_s30 + $0x8] sm:$0xff]  ;;  %vm291_vm0 = vcmask 130048   ;;  %v795_v4 = vmov 0   ;;  %v414_v25 = vld [vmem:[%s900_s23 + $0x10] sm:$0xff]  ;;  %v410_v47 = vlaneseq  ;;  %p594_p0 = scmp.ne.s32.totalorder %s776_s18, 1 }
  0x1e   : > { %v599_v2 = vld [vmem:[%s256_s30] sm:$0xff]  ;;  %305 = vmatpush.bf16.msra.mxu0 %v601_v1  ;;  %602 = vmatpush.bf16.msra.mxu1 %v601_v1  ;;  %v413_v24 = vld [vmem:[%s900_s23 + $0x8] sm:$0xff]  ;;  %v415_v26 = vld [vmem:[%s900_s23 + $0x18] sm:$0xff] }
  0x1f   : > { %677 = vset.pattern.permute.xlu0 %v795_v4  ;;  %678 = vset.pattern.permute.xlu1 %v795_v4  ;;  %v679_v5 = vld [vmem:[%s1024_s3] ss:$0 sm:$0xff]  ;;  %v680_v10 = vld [vmem:[%s1024_s3 + $0x1] ss:$0 sm:$0xff]  ;;  %v931_v51 = vand.u32 127, %v410_v47 }
  0x20   : > { %676 = vset.pattern.permute.xlu2 %v795_v4  ;;  %v412_v17 = vld [vmem:[%s900_s23] sm:$0xff] }
  0x21   : > { %588 = vmatmul.msk.bf16.vlgmr.msra.gmra.mxu0 %vm291_vm0, %v599_v2  ;;  %589 = vmatmul.msk.bf16.vlgmr.msra.gmra.mxu1 %vm291_vm0, %v600_v3 }
  0x22   : > { %417 = vperm.xlu2 %676, %v412_v17  }
  0x2a   : > { %420 = vperm.xlu2 %676, %v413_v24  }
  0x7c   : > { %v418_v49 = vpop.permute.xlu2 %417 }
  0x7d   : > { %vm428_vm1 = vcmp.eq.s32.totalorder %v418_v49, %v931_v51 }
  0x9e   : > { %v307_v6 = vpop.f32.mrf.mxu0  ;;  %v312_v7 = vpop.f32.mrf.mxu1 }
  0x9f   : > { %v308_v8 = vadd.f32 %v679_v5, %v307_v6  ;;  %v313_v9 = vadd.f32 %v679_v5, %v312_v7  ;;  %v421_v7 = vpop.permute.xlu2 %420 }
  0xa0   : > { %vm429_vm15 = vcmp.eq.s32.totalorder %v421_v7, %v931_v51 }
  0xa1   : > { %v317_v11 = vmax.f32 %v308_v8, 0.0  ;;  %v319_v12 = vmax.f32 %v313_v9, 0.0 }
  0xa3   : > { %v324_v13 = vmul.f32 %v680_v10, %v319_v12  ;;  %v322_v14 = vmul.f32 %v680_v10, %v317_v11 }
  0xa5   : > { %330 = vadd.xlane.f32.xlu1 %v324_v13  ;;  %326 = vadd.xlane.f32.xlu0 %v322_v14 }
  0xa6   : > { %v309_v15 = vpop.f32.mrf.mxu0  ;;  %v314_v16 = vpop.f32.mrf.mxu1 }
  0xa7   : > { %v310_v18 = vadd.f32 %v679_v5, %v309_v15  ;;  %v315_v19 = vadd.f32 %v679_v5, %v314_v16 }
  0xa9   : > { %v318_v20 = vmax.f32 %v310_v18, 0.0  ;;  %v320_v21 = vmax.f32 %v315_v19, 0.0 }
  0xab   : > { %v325_v22 = vmul.f32 %v680_v10, %v320_v21  ;;  %v323_v23 = vmul.f32 %v680_v10, %v318_v20 }
  0xad   : > { %332 = vadd.xlane.f32.xlu1 %v325_v22  ;;  %328 = vadd.xlane.f32.xlu0 %v323_v23 }
  0xc1   : > { %423 = vperm.xlu0 %677, %v414_v25  }
  0xc6   : > { %426 = vperm.xlu1 %678, %v415_v26  }
 0x118   : > { %v331_v27 = vpop.xlane.xlu1 %330  ;;  %v327_v28 = vpop.xlane.xlu0 %326 }
 0x119   : > { %v592_v29 = vmul.f32 -1.442695, %v331_v27  ;;  %v590_v30 = vmul.f32 -1.442695, %v327_v28 }
 0x11b   : > { %681 = vpow2.f32 %v592_v29 }
 0x11c   : > { %683 = vpow2.f32 %v590_v30 }
 0x120   : > { %v333_v31 = vpop.xlane.xlu1 %332  ;;  %v329_v32 = vpop.xlane.xlu0 %328 }
 0x121   : > { %v682_v33 = vpop.eup %681  ;;  %v593_v34 = vmul.f32 -1.442695, %v333_v31  ;;  %v591_v37 = vmul.f32 -1.442695, %v329_v32 }
 0x122   : > { %v684_v35 = vpop.eup %683  ;;  %v920_v36 = vadd.f32 1.0, %v682_v33 }
 0x123   : > { %v346_v38 = vadd.f32 1.0, %v684_v35  ;;  %685 = vpow2.f32 %v593_v34 }
 0x124   : > { %687 = vrcp.f32 %v920_v36  ;;  %vm385_vm3 = vweird.f32 %v920_v36  ;;  %v389_v62 = vand.u32 2147483647, %v920_v36  ;;  %v391_v5 = vand.u32 2147483648, %v920_v36 }
 0x125   : > { %689 = vrcp.f32 %v346_v38  ;;  %v359_v60 = vand.u32 2147483647, %v346_v38  ;;  %v361_v61 = vand.u32 2147483648, %v346_v38  ;;  %vm355_vm4 = vweird.f32 %v346_v38 }
 0x126   : > { %691 = vpow2.f32 %v591_v37  ;;  %v392_v20 = vor.u32 1.1754944e-38, %v391_v5 }
 0x127   : > { %vm360_vm9 = vcmp.eq.f32.partialorder %v359_v60, 8.507059e+37  ;;  %v362_v10 = vor.u32 1.1754944e-38, %v361_v61 }
 0x129   : > { %v686_v39 = vpop.eup %685 }
 0x12a   : > { %v923_v40 = vpop.eup %687  ;;  %v925_v41 = vadd.f32 1.0, %v686_v39 }
 0x12b   : > { %v690_v42 = vpop.eup %689  ;;  %v381_v45 = vmul.f32 %v923_v40, %v920_v36  ;;  %vm386_vm5 = vweird.f32 %v923_v40 }
 0x12c   : > { %v692_v43 = vpop.eup %691  ;;  %693 = vrcp.f32 %v925_v41  ;;  %v351_v44 = vmul.f32 %v690_v42, %v346_v38  ;;  %vm356_vm2 = vweird.f32 %v690_v42  ;;  %vm949_vm10 = vmor %vm385_vm3, %vm386_vm5  ;;  %vm400_vm11 = vweird.f32 %v925_v41 }
 0x12d   : > { %v347_v46 = vadd.f32 1.0, %v692_v43  ;;  %v382_v50 = vsub.f32 1.0, %v381_v45  ;;  %vm940_vm6 = vmor %vm355_vm4, %vm356_vm2  ;;  %v406_v12 = vand.u32 2147483648, %v925_v41  ;;  %v404_v17 = vand.u32 2147483647, %v925_v41 }
 0x12e   : > { %v352_v48 = vsub.f32 1.0, %v351_v44  ;;  %vm390_vm2 = vcmp.eq.f32.partialorder %v389_v62, 8.507059e+37 }
 0x12f   : > { %695 = vrcp.f32 %v347_v46  ;;  %v383_v55 = vmul.f32 %v923_v40, %v382_v50  ;;  %v374_v3 = vand.u32 2147483647, %v347_v46  ;;  %v376_v4 = vand.u32 2147483648, %v347_v46 }
 0x130   : > { %v353_v53 = vmul.f32 %v690_v42, %v352_v48  ;;  %vm370_vm12 = vweird.f32 %v347_v46  ;;  %v407_v26 = vor.u32 1.1754944e-38, %v406_v12  ;;  %vm405_vm4 = vcmp.eq.f32.partialorder %v404_v17, 8.507059e+37 }
 0x131   : > { %v384_v1 = vadd.f32 %v923_v40, %v383_v55  ;;  %v377_v19 = vor.u32 1.1754944e-38, %v376_v4  ;;  %vm375_vm0 = vcmp.eq.f32.partialorder %v374_v3, 8.507059e+37 }
 0x132   : > { %v694_v52 = vpop.eup %693  ;;  %v354_v58 = vadd.f32 %v690_v42, %v353_v53 }
 0x133   : > { %v396_v54 = vmul.f32 %v694_v52, %v925_v41  ;;  %vm401_vm7 = vweird.f32 %v694_v52  ;;  %v388_v14 = vsel %vm949_vm10, %v923_v40, %v384_v1  ;;  %v424_v15 = vpop.permute.xlu0 %423  ;;  %v436_v40 = vld [vmem:[#allocation2] sm:$0x1] }
 0x134   : > { %v358_v6 = vsel %vm940_vm6, %v690_v42, %v354_v58  ;;  %vm959_vm13 = vmor %vm400_vm11, %vm401_vm7  ;;  %v393_v25 = vsel %vm390_vm2, %v392_v20, %v388_v14  ;;  %vm430_vm3 = vcmp.eq.s32.totalorder %v424_v15, %v931_v51 }
 0x135   : > { %v696_v56 = vpop.eup %695  ;;  %v397_v57 = vsub.f32 1.0, %v396_v54  ;;  %v363_v18 = vsel %vm360_vm9, %v362_v10, %v358_v6  ;;  %v434_v31 = vsel %vm430_vm3, %v393_v25, 0.0 }
 0x136   : > { %v366_v59 = vmul.f32 %v696_v56, %v347_v46  ;;  %vm371_vm8 = vweird.f32 %v696_v56  ;;  %v432_v27 = vsel %vm428_vm1, %v363_v18, 0.0 }
 0x137   : > { %v398_v63 = vmul.f32 %v694_v52, %v397_v57  ;;  %vm372_vm14 = vmor %vm370_vm12, %vm371_vm8 }
 0x138   : > { %v367_v0 = vsub.f32 1.0, %v366_v59  ;;  %v427_v23 = vpop.permute.xlu1 %426 }
 0x139   : > { %v399_v9 = vadd.f32 %v694_v52, %v398_v63  ;;  %vm431_vm5 = vcmp.eq.s32.totalorder %v427_v23, %v931_v51 }
 0x13a   : > { %v368_v8 = vmul.f32 %v696_v56, %v367_v0 }
 0x13b   : > { %v403_v22 = vsel %vm959_vm13, %v694_v52, %v399_v9 }
 0x13c   : > { %v369_v13 = vadd.f32 %v696_v56, %v368_v8  ;;  %v408_v30 = vsel %vm405_vm4, %v407_v26, %v403_v22 }
 0x13d   : > { %v435_v33 = vsel %vm431_vm5, %v408_v30, 0.0 }
 0x13e   : > { %v373_v21 = vsel %vm372_vm14, %v696_v56, %v369_v13 }
 0x13f   : > { %v378_v24 = vsel %vm375_vm0, %v377_v19, %v373_v21 }
 0x140   : > { %v433_v28 = vsel %vm429_vm15, %v378_v24, 0.0 }
 0x141   : > { %v437_v29 = vadd.f32 %v433_v28, %v432_v27 }
 0x143   : > { %v438_v32 = vadd.f32 %v437_v29, %v434_v31 }
 0x145   : > { %v439_v34 = vadd.f32 %v438_v32, %v435_v33 }
 0x147   : > { %v440_v35 = vrot.slane %v439_v34, 4 }
 0x149   : > { %v441_v36 = vadd.f32 %v440_v35, %v439_v34 }
 0x14b   : > { %v442_v37 = vrot.slane %v441_v36, 2 }
 0x14d   : > { %v443_v38 = vadd.f32 %v442_v37, %v441_v36 }
 0x14f   : > { %v444_v39 = vrot.slane %v443_v38, 1 }
 0x151   : > { %v445_v41 = vadd.f32 %v444_v39, %v443_v38  ;;  %451 = sbr.rel (%p594_p0) target bundleno = 351 (0x15f), region = 44 }
 0x153   : > { %v446_v42 = vadd.f32 %v445_v41, %v436_v40 }
 0x155   : > { %447 = vst [vmem:[#allocation2] sm:$0x1] %v446_v42 }
 0x156   : > { %v453_v43 = vshrl.u32 %v410_v47, 7 }
 0x158   : > { %vm454_vm1 = vcmp.eq.s32.totalorder %v453_v43, 0 }
 0x15c   : > { %v697_v44 = vld [vmem:[#allocation2] ss:$0 sm:$0xff] }
 0x15d   : > { %v459_v45 = vsel %vm454_vm1, %v697_v44, 0.0 }
 0x15e   : > { %460 = vst [vmem:[%s239_s26] sm:$0xff] %v459_v45 }
 0x15f PF: > { %s596_s14 = sshll.u32 %s780_s19, 3  ;;  %s474_s18 = sshll.u32 %s239_s26, 4  ;;  %s475_s18 = int_to_ptr.vmem [resolvable:$true] %s474_s18 }
 0x160   : > { %s472_s29 = scalar_lea.hbm %s1025_s4, %s596_s14  ;;  %s462_s7 = scalar_lea.sflag [#allocation4], %s237_s6 }
 0x161   : > { %s476_s30 = sshll.u32 %s472_s29, 4  ;;  %s718_s12 = scalar_lea.hbm %s1025_s4, 16  ;;  %s477_s30 = int_to_ptr.hbm [resolvable:$true] %s476_s30 }
 0x162   : > { %s712_s9 = sshra.s32 %s477_s30, 4  ;;  %s713_s9 = int_to_ptr.hbm [resolvable:$true] %s712_s9 }
 0x163   : > { %s714_s10 = scalar_lea.hbm %s713_s9, 8  ;;  %p719_p5 = scmp.lt.s32.totalorder %s713_s9, %s1025_s4 }
 0x164   : > { %p715_p1 = scmp.ne.s32.totalorder %s713_s9, %s714_s10  ;;  %p720_p6 = scmp.lt.s32.totalorder %s718_s12, %s714_s10 }
 0x166   : > { %p716_p2 = pnand %p715_p1, %p870_p3  ;;  %p721_p7 = por %p720_p6, %p719_p5 }
 0x168   : > { %p717_p4 = pneg %p716_p2 }
 0x16a   : > { %p722_p8 = pnand %p721_p7, %p717_p4 }
 0x16c   : > { %725 = shalt.err (!%p722_p8)
}
 0x16d   : > { %603 = dma.vmem_to_hbm [thread:$0]  (%p870_p3), %s475_s18, 128, %s477_s30, %s462_s7  }
 0x16e PF: > { %p609_p10 = scmp.ge.s32.totalorder %s792_s22, 2  ;;  %s488_s26 = sand.u32 1, %s764_s15  }
 0x16f   : > { %s489_s6 = scalar_lea.sflag [#allocation4], %s488_s26 }
 0x170   : > { %p606_p11 = pnand %p609_p10, %p880_p9 }
 0x172   : > { %p607_p12 = pneg %p606_p11 }
 0x174   : > { %759 = dma.done.wait (%p607_p12), %s489_s6, 128  }
 0x175   : > { %761 = vsyncadd (%p607_p12), %s489_s6, 4294967168  ;;  %s17_s22 = sadd.s32 1, %s792_s22   ;;  %s1036_s27 = sld [smem:[#allocation6_spill]] }
 0x176   : > { %p14_p13 = scmp.ge.s32.totalorder %s17_s22, 6   ;;  %s1037_s15 = smov %s768_s16 }
 0x177   : > { %s1038_s16 = smov %s772_s17  ;;  %s1039_s17 = smov %s888_s5 }
 0x178   : > { %s1040_s18 = smov %s784_s20  ;;  %s1041_s19 = smov %s788_s21 }
 0x179   : > { %s1042_s20 = smov %s1045_s25  ;;  %16 = sbr.rel (!%p14_p13) target bundleno = 5 (0x5), region = 82 }
 0x17b   : > { %s1043_s21 = smov %s1036_s27 }
 0x17e   :  { %495 = vsyncpa [#allocation4], 1 }
 0x17f   :  { %497 = vsyncpa [#allocation4 + $0x1], 1 }

</bundles_post_ra>
